<compile_context>
chip_gen: v7x
topology: tpu7x:2x2x1
jax: 0.10.0
libtpu: 0.0.40
codegen_flags: <defaults>
</compile_context>

<pallas_src>
import functools

import jax
import jax.numpy as jnp
from jax.experimental import pallas as pl
from jax.experimental.pallas import tpu as pltpu

_LANE = 128
_SUBLANE_BF16 = 16  # bf16 packs 2 rows per sublane -> batch tile multiple of 16


def _round_up(x, m):
    return ((x + m - 1) // m) * m


def _mlp_kernel(num_layers, x_ref, *refs):
    """Kernel body.

    refs = (W0_ref, b0_ref, W1_ref, b1_ref, ..., out_ref)
    Layers 0..num_layers-2 are Linear+Tanh, the last layer is Linear only
    (action head producing logits).  Weights are [in, out] bf16, biases are
    [1, out] f32, activations stay bf16 between matmuls with f32 MXU
    accumulation; tanh is evaluated in f32 (v5e has no bf16 VPU/EUP).
    """
    out_ref = refs[-1]
    param_refs = refs[:-1]

    h = x_ref[...].astype(jnp.bfloat16)  # cast once, hoisted out of layer loop
    for layer in range(num_layers):
        w_ref = param_refs[2 * layer]
        b_ref = param_refs[2 * layer + 1]
        acc = jnp.dot(h, w_ref[...], preferred_element_type=jnp.float32)
        acc = acc + b_ref[...]  # (1, out) broadcasts over batch rows
        if layer < num_layers - 1:
            h = jnp.tanh(acc).astype(jnp.bfloat16)
        else:
            out_ref[...] = acc.astype(out_ref.dtype)


def prepare_params(weights, biases):
    """Prepare parameters ONCE at init (hoisted out of the forward path).

    Hidden-layer output dims are zero-padded to a multiple of 128 lanes
    (numerically exact: padded columns get zero weight & zero bias and
    tanh(0)=0 contributes nothing downstream).  The FINAL layer keeps its
    true action_dim so the HBM writeback only carries useful bytes.
    Weights are cast to bf16 for the MXU; biases stay f32.
    """
    num_layers = len(weights)
    w_out, b_out = [], []
    prev = weights[0].shape[0]  # input feature dim stays unpadded
    for i, (w, b) in enumerate(zip(weights, biases)):
        fin, fout = w.shape
        is_last = i == num_layers - 1
        fout_pad = fout if is_last else max(_LANE, _round_up(fout, _LANE))
        w_full = (
            jnp.zeros((prev, fout_pad), jnp.float32)
            .at[:fin, :fout]
            .set(jnp.asarray(w, jnp.float32))
        )
        b_full = (
            jnp.zeros((1, fout_pad), jnp.float32)
            .at[:, :fout]
            .set(jnp.asarray(b, jnp.float32).reshape(1, fout))
        )
        w_out.append(w_full.astype(jnp.bfloat16))
        b_out.append(b_full)
        prev = fout_pad
    return w_out, b_out


def _choose_batch_tile(batch, block_batch):
    """Batch tile: multiple of 16, <= block_batch, and capped so the grid has
    at least 2 tiles when batch allows (feeds both v7x TensorCores)."""
    tb = min(int(block_batch), _round_up(batch, _SUBLANE_BF16))
    if batch > _SUBLANE_BF16:
        half = _round_up((batch + 1) // 2, _SUBLANE_BF16)
        tb = min(tb, half)
    return max(_SUBLANE_BF16, (tb // _SUBLANE_BF16) * _SUBLANE_BF16)


def discrete_policy_forward(x, prepared_weights, prepared_biases, *, block_batch=2048):
    """Compute action logits = MLP(x) with a single batch-tiled Pallas call.

    Args:
      x:                 [batch, input_dim] f32
      prepared_weights:  output of prepare_params (bf16, hidden dims padded)
      prepared_biases:   output of prepare_params (f32)
      block_batch:       max rows per grid step (rounded to a multiple of 16).
    Returns:
      [batch, action_dim] f32 action logits.
    """
    assert len(prepared_weights) == len(prepared_biases)
    num_layers = len(prepared_weights)
    batch, input_dim = x.shape
    assert prepared_weights[0].shape[0] == input_dim
    action_dim = prepared_weights[-1].shape[1]  # last layer is NOT padded

    tb = _choose_batch_tile(batch, block_batch)
    padded_batch = _round_up(batch, tb)
    if padded_batch != batch:
        x = jnp.pad(x, ((0, padded_batch - batch), (0, 0)))
    n_tiles = pl.cdiv(padded_batch, tb)

    # x / out stream over the batch grid; params use constant index_maps so
    # Pallas fetches them from HBM once and keeps them VMEM-resident.
    in_specs = [pl.BlockSpec((tb, input_dim), lambda i: (i, 0))]
    args = [x]
    for w, b in zip(prepared_weights, prepared_biases):
        in_specs.append(pl.BlockSpec(w.shape, lambda i: (0, 0)))
        in_specs.append(pl.BlockSpec(b.shape, lambda i: (0, 0)))
        args.append(w)
        args.append(b)

    # Output block's last dim equals the full array dim (action_dim), so the
    # (8,128) rule is satisfied without padding the writeback to 128 lanes.
    out_spec = pl.BlockSpec((tb, action_dim), lambda i: (i, 0))

    kernel = functools.partial(_mlp_kernel, num_layers)

    logits_padded = pl.pallas_call(
        kernel,
        out_shape=jax.ShapeDtypeStruct((padded_batch, action_dim), jnp.float32),
        grid_spec=pltpu.PrefetchScalarGridSpec(
            num_scalar_prefetch=0,
            grid=(n_tiles,),
            in_specs=in_specs,
            out_specs=out_spec,
        ),
        compiler_params=pltpu.CompilerParams(
            dimension_semantics=("parallel",),  # v7x: 2 TCs split batch tiles
        ),
    )(*args)

    return logits_padded[:batch]


def init_params(key, input_dim, hidden_dims, action_dim):
    """Deterministic init matching nn.Linear default (U(-1/sqrt(fan_in), 1/sqrt(fan_in)))."""
    dims = [input_dim] + list(hidden_dims) + [action_dim]
    weights, biases = [], []
    for i in range(len(dims) - 1):
        fan_in, fan_out = dims[i], dims[i + 1]
        key, kw, kb = jax.random.split(key, 3)
        bound = 1.0 / jnp.sqrt(jnp.float32(fan_in))
        # Stored as [in_dim, out_dim] (transpose of torch's [out, in]).
        w = jax.random.uniform(kw, (fan_in, fan_out), jnp.float32, -bound, bound)
        b = jax.random.uniform(kb, (1, fan_out), jnp.float32, -bound, bound)
        weights.append(w)
        biases.append(b)
    return weights, biases


if __name__ == "__main__":
    # Config analogous to DiscretePolicyConfig(input_dim=32, action_dim=8, hidden_dims=[32, 32])
    input_dim = 32
    action_dim = 8
    hidden_dims = [32, 32]
    batch = 64  # test batch -> tile=32, grid of 2 batch tiles

    key = jax.random.PRNGKey(0)
    key, kx = jax.random.split(key)
    x = jax.random.normal(kx, (batch, input_dim), jnp.float32)

    weights, biases = init_params(key, input_dim, hidden_dims, action_dim)

    # Parameter prep is done once, outside the forward path (per review).
    w_prep, b_prep = prepare_params(weights, biases)

    logits = discrete_policy_forward(x, w_prep, b_prep)
    jax.block_until_ready(logits)

    # Pure-JAX f32 reference check of the forward pass (kernel uses bf16 on
    # the MXU, so tolerance is loosened accordingly).
    h = x
    for i, (w, b) in enumerate(zip(weights, biases)):
        h = h @ w + b
        if i < len(weights) - 1:
            h = jnp.tanh(h)
    assert logits.shape == (batch, action_dim)
    assert jnp.allclose(logits, h, atol=2e-2, rtol=2e-2), float(
        jnp.max(jnp.abs(logits - h)))

    # TODO(synk): sample_action / evaluate_actions (Categorical sample, log_prob,
    # entropy) could be fused after the final layer with pltpu.prng_seed /
    # pltpu.prng_random_bits to emit [tb, 1] actions instead of logits, removing
    # essentially all output HBM traffic; not implemented here since forward()
    # returns logits.
    print("KERNEL_OK")
</pallas_src>

<mosaic_0001>
module attributes {stable_mosaic.version = 11 : i64} {
  func.func @_mlp_kernel(%arg0: i32, %arg1: memref<32x32xf32, #tpu.memory_space<vmem>>, %arg2: memref<32x128xbf16, #tpu.memory_space<vmem>>, %arg3: memref<1x128xf32, #tpu.memory_space<vmem>>, %arg4: memref<128x128xbf16, #tpu.memory_space<vmem>>, %arg5: memref<1x128xf32, #tpu.memory_space<vmem>>, %arg6: memref<128x8xbf16, #tpu.memory_space<vmem>>, %arg7: memref<1x8xf32, #tpu.memory_space<vmem>>, %arg8: memref<32x8xf32, #tpu.memory_space<vmem>>) attributes {dimension_semantics = [#tpu.dimension_semantics<parallel>], iteration_bounds = array<i64: 2>, scalar_prefetch = 0 : i64, scratch_operands = 0 : i64, tpu.core_type = #tpu.core_type<tc>, window_params = [{transform_indices = @transform_0, window_bounds = array<i64: 32, 32>}, {pipeline_mode = #tpu.pipeline_mode<synchronous>, transform_indices = @transform_1, window_bounds = array<i64: 32, 128>}, {pipeline_mode = #tpu.pipeline_mode<synchronous>, transform_indices = @transform_2, window_bounds = array<i64: 1, 128>}, {pipeline_mode = #tpu.pipeline_mode<synchronous>, transform_indices = @transform_3, window_bounds = array<i64: 128, 128>}, {pipeline_mode = #tpu.pipeline_mode<synchronous>, transform_indices = @transform_4, window_bounds = array<i64: 1, 128>}, {pipeline_mode = #tpu.pipeline_mode<synchronous>, transform_indices = @transform_5, window_bounds = array<i64: 128, 8>}, {pipeline_mode = #tpu.pipeline_mode<synchronous>, transform_indices = @transform_6, window_bounds = array<i64: 1, 8>}, {transform_indices = @transform_7, window_bounds = array<i64: 32, 8>}]} {
    %c0 = arith.constant 0 : index
    %c0_0 = arith.constant 0 : index
    %0 = vector.load %arg1[%c0, %c0_0] : memref<32x32xf32, #tpu.memory_space<vmem>>, vector<32x32xf32>
    %1 = arith.truncf %0 : vector<32x32xf32> to vector<32x32xbf16>
    %c0_1 = arith.constant 0 : index
    %c0_2 = arith.constant 0 : index
    %2 = vector.load %arg2[%c0_1, %c0_2] : memref<32x128xbf16, #tpu.memory_space<vmem>>, vector<32x128xbf16>
    %cst = arith.constant dense<0.000000e+00> : vector<32x128xf32>
    %3 = tpu.matmul %1, %2, %cst {dimension_numbers = #tpu.dot_dimension_numbers<[1], [0], [0], [1], [0, 0, 1, 1], [], []>} : vector<32x32xbf16>, vector<32x128xbf16>, vector<32x128xf32> -> vector<32x128xf32>
    %c0_3 = arith.constant 0 : index
    %c0_4 = arith.constant 0 : index
    %4 = vector.load %arg3[%c0_3, %c0_4] : memref<1x128xf32, #tpu.memory_space<vmem>>, vector<1x128xf32>
    %5 = vector.broadcast %4 : vector<1x128xf32> to vector<32x128xf32>
    %6 = arith.addf %3, %5 : vector<32x128xf32>
    %7 = math.tanh %6 : vector<32x128xf32>
    %8 = arith.truncf %7 : vector<32x128xf32> to vector<32x128xbf16>
    %c0_5 = arith.constant 0 : index
    %c0_6 = arith.constant 0 : index
    %9 = vector.load %arg4[%c0_5, %c0_6] : memref<128x128xbf16, #tpu.memory_space<vmem>>, vector<128x128xbf16>
    %cst_7 = arith.constant dense<0.000000e+00> : vector<32x128xf32>
    %10 = tpu.matmul %8, %9, %cst_7 {dimension_numbers = #tpu.dot_dimension_numbers<[1], [0], [0], [1], [0, 0, 1, 1], [], []>} : vector<32x128xbf16>, vector<128x128xbf16>, vector<32x128xf32> -> vector<32x128xf32>
    %c0_8 = arith.constant 0 : index
    %c0_9 = arith.constant 0 : index
    %11 = vector.load %arg5[%c0_8, %c0_9] : memref<1x128xf32, #tpu.memory_space<vmem>>, vector<1x128xf32>
    %12 = vector.broadcast %11 : vector<1x128xf32> to vector<32x128xf32>
    %13 = arith.addf %10, %12 : vector<32x128xf32>
    %14 = math.tanh %13 : vector<32x128xf32>
    %15 = arith.truncf %14 : vector<32x128xf32> to vector<32x128xbf16>
    %c0_10 = arith.constant 0 : index
    %c0_11 = arith.constant 0 : index
    %16 = vector.load %arg6[%c0_10, %c0_11] : memref<128x8xbf16, #tpu.memory_space<vmem>>, vector<128x8xbf16>
    %cst_12 = arith.constant dense<0.000000e+00> : vector<32x8xf32>
    %17 = tpu.matmul %15, %16, %cst_12 {dimension_numbers = #tpu.dot_dimension_numbers<[1], [0], [0], [1], [0, 0, 1, 1], [], []>} : vector<32x128xbf16>, vector<128x8xbf16>, vector<32x8xf32> -> vector<32x8xf32>
    %c0_13 = arith.constant 0 : index
    %c0_14 = arith.constant 0 : index
    %18 = vector.load %arg7[%c0_13, %c0_14] : memref<1x8xf32, #tpu.memory_space<vmem>>, vector<1x8xf32>
    %19 = vector.broadcast %18 : vector<1x8xf32> to vector<32x8xf32>
    %20 = arith.addf %17, %19 : vector<32x8xf32>
    %c0_15 = arith.constant 0 : index
    %c0_16 = arith.constant 0 : index
    %21 = vector.load %arg8[%c0_15, %c0_16] : memref<32x8xf32, #tpu.memory_space<vmem>>, vector<32x8xf32>
    tpu.vector_store %arg8[%c0_15, %c0_16], %20 {strides = array<i32>} : memref<32x8xf32, #tpu.memory_space<vmem>>, vector<32x8xf32>,
    return
  }
  func.func @transform_0(%arg0: i32) -> (i32, i32) {
    %c0_i32 = arith.constant 0 : i32
    %c0_i32_0 = arith.constant 0 : i32
    return %arg0, %c0_i32 : i32, i32
  }
  func.func @transform_1(%arg0: i32) -> (i32, i32) {
    %c0_i32 = arith.constant 0 : i32
    %c0_i32_0 = arith.constant 0 : i32
    %c0_i32_1 = arith.constant 0 : i32
    return %c0_i32, %c0_i32_0 : i32, i32
  }
  func.func @transform_2(%arg0: i32) -> (i32, i32) {
    %c0_i32 = arith.constant 0 : i32
    %c0_i32_0 = arith.constant 0 : i32
    %c0_i32_1 = arith.constant 0 : i32
    return %c0_i32, %c0_i32_0 : i32, i32
  }
  func.func @transform_3(%arg0: i32) -> (i32, i32) {
    %c0_i32 = arith.constant 0 : i32
    %c0_i32_0 = arith.constant 0 : i32
    %c0_i32_1 = arith.constant 0 : i32
    return %c0_i32, %c0_i32_0 : i32, i32
  }
  func.func @transform_4(%arg0: i32) -> (i32, i32) {
    %c0_i32 = arith.constant 0 : i32
    %c0_i32_0 = arith.constant 0 : i32
    %c0_i32_1 = arith.constant 0 : i32
    return %c0_i32, %c0_i32_0 : i32, i32
  }
  func.func @transform_5(%arg0: i32) -> (i32, i32) {
    %c0_i32 = arith.constant 0 : i32
    %c0_i32_0 = arith.constant 0 : i32
    %c0_i32_1 = arith.constant 0 : i32
    return %c0_i32, %c0_i32_0 : i32, i32
  }
  func.func @transform_6(%arg0: i32) -> (i32, i32) {
    %c0_i32 = arith.constant 0 : i32
    %c0_i32_0 = arith.constant 0 : i32
    %c0_i32_1 = arith.constant 0 : i32
    return %c0_i32, %c0_i32_0 : i32, i32
  }
  func.func @transform_7(%arg0: i32) -> (i32, i32) {
    %c0_i32 = arith.constant 0 : i32
    %c0_i32_0 = arith.constant 0 : i32
    return %arg0, %c0_i32 : i32, i32
  }
}

</mosaic_0001>

<bundles_post_ra>
// kernel: tpu_custom_call.1
= control target key start
LH: loop header
LB: loop body
LE: loop exit
PB: predicated region body
PF: predicated region fallthrough
CT: control target
= control target key end

     0   :  { %s877_s24 = smov 0   ;;  %s964_s0 = inlined_call_operand.vmem [shape: f32[64,32], index: 0, kind: input, shape index: {}]   ;;  %s965_s1 = inlined_call_operand.vmem [shape: bf16[32,128], index: 1, kind: input, shape index: {}]   ;;  %s966_s2 = inlined_call_operand.vmem [shape: f32[1,128], index: 2, kind: input, shape index: {}]   ;;  %s967_s3 = inlined_call_operand.vmem [shape: bf16[128,128], index: 3, kind: input, shape index: {}]   ;;  %s968_s4 = inlined_call_operand.vmem [shape: f32[1,128], index: 4, kind: input, shape index: {}]   ;;  %s969_s5 = inlined_call_operand.vmem [shape: bf16[128,8], index: 5, kind: input, shape index: {}]   ;;  %s970_s6 = inlined_call_operand.vmem [shape: f32[1,8], index: 6, kind: input, shape index: {}]   ;;  %s971_s7 = inlined_call_operand.vmem [shape: f32[64,8], index: 7, kind: output, shape index: {}]  }
   0x1 LB: > { %s681_s25 = sadd.s32 4294967295, %s835_s24   ;;  %p685_p0 = scmp.ge.s32.totalorder %s835_s24, 1  ;;  %s835_s24 = sphi %s877_s24, %s17_s24  }
   0x2   : > { %p238_p1 = scmp.lt.s32.totalorder %s835_s24, 3 }
   0x4   : > { %p239_p2 = pnand %p685_p0, %p238_p1 }
   0x5   : > { %v795_v0 = vld [vmem:[%s965_s1] sm:$0xff] (!%p239_p2)   ;;  %s686_s28 = sshll.u32 (!%p239_p2), %s681_s25, 2  ;;  %v796_v1 = vld [vmem:[%s965_s1 + $0x8] sm:$0xff] (!%p239_p2)   ;;  %v799_v4 = vld [vmem:[%s967_s3 + $0x10] sm:$0xff] (!%p239_p2)   ;;  %vm312_vm0 = vcmask (!%p239_p2), 261120   ;;  %vm620_vm1 = vcmask (!%p239_p2), 64512  }
   0x6   : > { %242 = sbr.rel (%p239_p2) target bundleno = 700 (0x2bc), region = 48  ;;  %p271_p3 = scmp.lt.s32.totalorder (!%p239_p2), %s686_s28, 7  ;;  %739 = vmatprep.subr.bf16.mxu0 (!%p239_p2), %v795_v0  ;;  %v797_v2 = vld [vmem:[%s967_s3] sm:$0xff] (!%p239_p2)   ;;  %v798_v3 = vld [vmem:[%s967_s3 + $0x8] sm:$0xff] (!%p239_p2)   ;;  %v800_v11 = vld [vmem:[%s967_s3 + $0x18] sm:$0xff] (!%p239_p2)  }
   0x7   : > { %740 = vmatpush3.bf16.msra.mxu0 (!%p239_p2), %v795_v0  ;;  %747 = vmatprep.subr.bf16.mxu1 (!%p239_p2), %v797_v2  ;;  %v801_v12 = vld [vmem:[%s967_s3 + $0x20] sm:$0xff] (!%p239_p2)   ;;  %v802_v13 = vld [vmem:[%s967_s3 + $0x28] sm:$0xff] (!%p239_p2)   ;;  %v803_v14 = vld [vmem:[%s967_s3 + $0x30] sm:$0xff] (!%p239_p2)  }
   0x8   : > { %741 = vmatprep.subr.bf16.mxu0 (!%p239_p2), %v796_v1  ;;  %748 = vmatpush3.bf16.msra.mxu1 (!%p239_p2), %v797_v2  ;;  %v804_v15 = vld [vmem:[%s967_s3 + $0x38] sm:$0xff] (!%p239_p2)   ;;  %v805_v16 = vld [vmem:[%s969_s5] sm:$0xff] (!%p239_p2)   ;;  %v806_v17 = vld [vmem:[%s969_s5 + $0x8] sm:$0xff] (!%p239_p2)  }
   0x9   : > { %749 = vmatprep.subr.bf16.mxu1 (!%p239_p2), %v798_v3  ;;  %v807_v18 = vld [vmem:[%s969_s5 + $0x10] sm:$0xff] (!%p239_p2)   ;;  %v690_v19 = vld [vmem:[%s966_s2] ss:$0 sm:$0xff] (!%p239_p2)  ;;  %v808_v34 = vld [vmem:[%s969_s5 + $0x18] sm:$0xff] (!%p239_p2)  }
   0xa   : > { %v809_v35 = vld [vmem:[%s969_s5 + $0x20] sm:$0xff] (!%p239_p2)   ;;  %v810_v36 = vld [vmem:[%s969_s5 + $0x28] sm:$0xff] (!%p239_p2)   ;;  %v811_v37 = vld [vmem:[%s969_s5 + $0x30] sm:$0xff] (!%p239_p2)  }
   0xb   : > { %742 = vmatpush3.bf16.msra.mxu0 (!%p239_p2), %v796_v1  ;;  %v812_v38 = vld [vmem:[%s969_s5 + $0x38] sm:$0xff] (!%p239_p2)   ;;  %v695_v39 = vld [vmem:[%s968_s4] ss:$0 sm:$0xff] (!%p239_p2) }
   0xc   : > { %750 = vmatpush3.bf16.msra.mxu1 (!%p239_p2), %v798_v3  ;;  %767 = vmatprep.subr.bf16.mxu0 (!%p239_p2), %v805_v16  ;;  %v704_v54 = vld [vmem:[%s970_s6] ss:$0 sm:$0xff] (!%p239_p2) }
   0xd   : > { %s973_s28 = smov (!%p271_p3, %s686_s28), 7  ;;  %751 = vmatprep.subr.bf16.mxu1 %v799_v4 }
   0xe   : > { %s687_s12 = sshll.u32 %s973_s28, 3 }
   0xf   : > { %s274_s17 = scalar_lea.vmem %s964_s0, %s687_s12  ;;  %s280_s11 = scalar_lea.vmem %s971_s7, %s687_s12 }
  0x10   : > { %v283_v5 = vld [vmem:[%s274_s17] sm:$0xff]  ;;  %v284_v6 = vld [vmem:[%s274_s17 + $0x8] sm:$0xff]  ;;  %v285_v7 = vld [vmem:[%s274_s17 + $0x10] sm:$0xff]  ;;  %752 = vmatpush3.bf16.msra.mxu1 %v799_v4 }
  0x11   : > { %v287_v8 = vpack.c.bf16 %v284_v6, %v283_v5  ;;  %v286_v9 = vld [vmem:[%s274_s17 + $0x18] sm:$0xff]  ;;  %753 = vmatprep.subr.bf16.mxu1 %v800_v11 }
  0x12   : > { %v288_v10 = vpack.c.bf16 %v286_v9, %v285_v7 }
  0x13   : > { %743 = vmatprep.mubr.msk.bf16.mxu0 %vm312_vm0, %v287_v8 }
  0x14   : > { %744 = vmatmul.mubr.msk.bf16.vlgmr.msra.gmra.mrb[0].mxu0 %vm312_vm0, %v288_v10  ;;  %754 = vmatpush3.bf16.msra.mxu1 %v800_v11 }
  0x15   : > { %755 = vmatprep.subr.bf16.mxu1 %v801_v12  ;;  %768 = vmatpush3.bf16.msra.mxu0 %v805_v16 }
  0x16   : > { %769 = vmatprep.subr.bf16.mxu0 %v806_v17 }
  0x18   : > { %756 = vmatpush3.bf16.msra.mxu1 %v801_v12 }
  0x19   : > { %757 = vmatprep.subr.bf16.mxu1 %v802_v13  ;;  %770 = vmatpush3.bf16.msra.mxu0 %v806_v17 }
  0x1a   : > { %771 = vmatprep.subr.bf16.mxu0 %v807_v18 }
  0x1c   : > { %758 = vmatpush3.bf16.msra.mxu1 %v802_v13 }
  0x1d   : > { %759 = vmatprep.subr.bf16.mxu1 %v803_v14  ;;  %772 = vmatpush3.bf16.msra.mxu0 %v807_v18 }
  0x1e   : > { %773 = vmatprep.subr.bf16.mxu0 %v808_v34 }
  0x20   : > { %760 = vmatpush3.bf16.msra.mxu1 %v803_v14 }
  0x21   : > { %761 = vmatprep.subr.bf16.mxu1 %v804_v15  ;;  %774 = vmatpush3.bf16.msra.mxu0 %v808_v34 }
  0x22   : > { %775 = vmatprep.subr.bf16.mxu0 %v809_v35 }
  0x24   : > { %762 = vmatpush3.bf16.msra.mxu1 %v804_v15 }
  0x25   : > { %776 = vmatpush3.bf16.msra.mxu0 %v809_v35 }
  0x26   : > { %777 = vmatprep.subr.bf16.mxu0 %v810_v36 }
  0x29   : > { %778 = vmatpush3.bf16.msra.mxu0 %v810_v36 }
  0x2a   : > { %779 = vmatprep.subr.bf16.mxu0 %v811_v37 }
  0x2d   : > { %780 = vmatpush3.bf16.msra.mxu0 %v811_v37 }
  0x2e   : > { %781 = vmatprep.subr.bf16.mxu0 %v812_v38 }
  0x31   : > { %782 = vmatpush3.bf16.msra.mxu0 %v812_v38 }
  0xe7   : > { %v745_v20 = vpop.f32.mrb[0].mxu0 }
  0xe8   : > { %v362_v21 = vadd.f32 %v745_v20, %v690_v19  ;;  %v353_v22 = vpop.f32.mrb[1].mxu0 }
  0xe9   : > { %v354_v23 = vadd.f32 %v690_v19, %v353_v22  ;;  %v746_v24 = vpop.f32.mrb[2].mxu0 }
  0xea   : > { %813 = vtanh.f32 %v362_v21  ;;  %v365_v25 = vadd.f32 %v746_v24, %v690_v19  ;;  %v356_v26 = vpop.f32.mrb[3].mxu0 }
  0xeb   : > { %815 = vtanh.f32 %v354_v23  ;;  %v357_v27 = vadd.f32 %v690_v19, %v356_v26 }
  0xec   : > { %817 = vtanh.f32 %v365_v25 }
  0xed   : > { %819 = vtanh.f32 %v357_v27 }
  0xf4   : > { %v814_v28 = vpop.eup %813 }
  0xf5   : > { %v816_v29 = vpop.eup %815 }
  0xf6   : > { %v818_v30 = vpop.eup %817 }
  0xf7   : > { %v820_v31 = vpop.eup %819  ;;  %v373_v32 = vpack.c.bf16 %v818_v30, %v814_v28 }
  0xf8   : > { %v372_v33 = vpack.c.bf16 %v820_v31, %v816_v29 }
  0xfa   : > { %763 = vmatprep.mubr.bf16.mxu1 %v372_v33 }
  0xfb   : > { %764 = vmatmul.mubr.bf16.vlgmr.msra.gmra.mrb[0].mxu1 %v373_v32 }
 0x1ce   : > { %v765_v40 = vpop.f32.mrb[0].mxu1 }
 0x1cf   : > { %v488_v41 = vadd.f32 %v765_v40, %v695_v39  ;;  %v479_v42 = vpop.f32.mrb[1].mxu1 }
 0x1d0   : > { %v480_v43 = vadd.f32 %v695_v39, %v479_v42  ;;  %v766_v44 = vpop.f32.mrb[2].mxu1 }
 0x1d1   : > { %821 = vtanh.f32 %v488_v41  ;;  %v491_v45 = vadd.f32 %v766_v44, %v695_v39  ;;  %v482_v46 = vpop.f32.mrb[3].mxu1 }
 0x1d2   : > { %823 = vtanh.f32 %v480_v43  ;;  %v483_v47 = vadd.f32 %v695_v39, %v482_v46 }
 0x1d3   : > { %825 = vtanh.f32 %v491_v45 }
 0x1d4   : > { %827 = vtanh.f32 %v483_v47 }
 0x1db   : > { %v822_v48 = vpop.eup %821 }
 0x1dc   : > { %v824_v49 = vpop.eup %823 }
 0x1dd   : > { %v826_v50 = vpop.eup %825 }
 0x1de   : > { %v828_v51 = vpop.eup %827  ;;  %v499_v52 = vpack.c.bf16 %v826_v50, %v822_v48 }
 0x1df   : > { %v498_v53 = vpack.c.bf16 %v828_v51, %v824_v49 }
 0x1e1   : > { %783 = vmatprep.mubr.bf16.mxu0 %v498_v53 }
 0x1e2   : > { %784 = vmatmul.mubr.bf16.vlgmr.msra.gmra.mrb[4].mxu0 %v499_v52 }
 0x2b5   : > { %v785_v55 = vpop.f32.mrb[4].mxu0 }
 0x2b6   : > { %v605_v56 = vpop.f32.mrb[5].mxu0  ;;  %v614_v61 = vadd.f32 %v785_v55, %v704_v54 }
 0x2b7   : > { %v606_v57 = vadd.f32 %v704_v54, %v605_v56  ;;  %v786_v58 = vpop.f32.mrb[6].mxu0 }
 0x2b8   : > { %v608_v59 = vpop.f32.mrb[7].mxu0  ;;  %v617_v62 = vadd.f32 %v786_v58, %v704_v54  ;;  %623 = vst.msk [vmem:[%s280_s11 + $0x10] sm:$0xff] %vm620_vm1, %v614_v61 }
 0x2b9   : > { %621 = vst.msk [vmem:[%s280_s11] sm:$0xff] %vm620_vm1, %v606_v57  ;;  %v609_v60 = vadd.f32 %v704_v54, %v608_v59 }
 0x2ba   : > { %624 = vst.msk [vmem:[%s280_s11 + $0x18] sm:$0xff] %vm620_vm1, %v617_v62 }
 0x2bb   : > { %622 = vst.msk [vmem:[%s280_s11 + $0x8] sm:$0xff] %vm620_vm1, %v609_v60 }
 0x2bc PF: > { %s17_s24 = sadd.s32 1, %s835_s24  }
 0x2bd   : > { %p14_p4 = scmp.ge.s32.totalorder %s17_s24, 4  }
 0x2bf   :  { %16 = sbr.rel (!%p14_p4) target bundleno = 1 (0x1), region = 78 }

</bundles_post_ra>
